<compile_context>
chip_gen: v6e
topology: v6e:2x2x1
jax: 0.10.0
libtpu: 0.0.40
codegen_flags: <defaults>
</compile_context>

<pallas_src>
import jax
import jax.numpy as jnp
from jax.experimental import pallas as pl
from jax.experimental.pallas import tpu as pltpu


def _round_up(n, m):
    return ((n + m - 1) // m) * m


# ---------------------------------------------------------------------------
# Kernels
# ---------------------------------------------------------------------------
def _hidden_kernel(x_ref, w_in_t_ref, h_ref):
    # Stage 1: partial hidden accumulation over V tiles.
    #   h (B, Ep) += x_tile (B, tv) @ W_in^T tile (tv, Ep)
    # Grid = (num_splits, n_k): axis 0 "parallel" (v7x megacore shares the
    # W_in stream), axis 1 "arbitrary" V reduction.  h_ref's block index is
    # constant along axis 1 -> resident f32 accumulator, no scratch needed.
    @pl.when(pl.program_id(1) == 0)
    def _():
        h_ref[...] = jnp.zeros_like(h_ref)

    h_ref[...] += jnp.dot(
        x_ref[...], w_in_t_ref[...], preferred_element_type=jnp.float32
    )


def _output_kernel(h_ref, w_out_t_ref, o_ref):
    # Stage 2: lane-dense output tile.
    #   out_tile (B, tv) = hidden (B, Ep) @ W_out^T tile (Ep, tv)
    o_ref[...] = jnp.dot(
        h_ref[...], w_out_t_ref[...], preferred_element_type=jnp.float32
    )


# ---------------------------------------------------------------------------
# One-time parameter preparation (layout plumbing hoisted out of the forward)
# ---------------------------------------------------------------------------
def prepare_skipgram_params(w_in, w_out, *, v_tile=2048,
                            weight_dtype=jnp.bfloat16):
    """Pre-transpose / zero-pad / cast the weights once.

    w_in  : (E, V)  PyTorch Linear(V, E).weight layout
    w_out : (V, E)  PyTorch Linear(E, V).weight layout
    Returns a dict consumed by `skipgram_forward`.
    """
    E, V = w_in.shape
    assert w_out.shape == (V, E)
    assert v_tile % 128 == 0

    tv = v_tile if V >= v_tile else _round_up(V, 128)     # lane-dense V tile
    Ep = _round_up(E, 128)                                 # lane-dense E

    n_tiles = -(-V // tv)
    if n_tiles >= 2:
        # v7x: split the V reduction of stage 1 across both TensorCores.
        num_splits = 2
        Vp = _round_up(V, 2 * tv)
    else:
        num_splits = 1
        Vp = _round_up(V, tv)

    w_in_t = jnp.zeros((Vp, Ep), weight_dtype).at[:V, :E].set(
        jnp.transpose(w_in).astype(weight_dtype))          # (Vp, Ep)
    w_out_t = jnp.zeros((Ep, Vp), weight_dtype).at[:E, :V].set(
        jnp.transpose(w_out).astype(weight_dtype))         # (Ep, Vp)

    return dict(w_in_t=w_in_t, w_out_t=w_out_t,
                V=V, E=E, Vp=Vp, Ep=Ep, tv=tv, num_splits=num_splits)


# ---------------------------------------------------------------------------
# Forward
# ---------------------------------------------------------------------------
def skipgram_forward(x, params):
    """out = (x @ w_in.T) @ w_out.T  with f32 accumulation (bf16 streams)."""
    w_in_t, w_out_t = params["w_in_t"], params["w_out_t"]
    V, Vp, Ep, tv = params["V"], params["Vp"], params["Ep"], params["tv"]
    num_splits = params["num_splits"]
    wdt = w_in_t.dtype
    wbytes = jnp.dtype(wdt).itemsize

    B = x.shape[0]
    assert x.shape == (B, V)

    n_tiles = Vp // tv
    n_k = n_tiles // num_splits

    # Only the tiny (B, V) input is padded per call.
    x_p = jnp.pad(x, ((0, 0), (0, Vp - V))).astype(wdt)    # (B, Vp)

    # ---- stage 1: partial hiddens = x @ W_in^T (parallel split x V tiles) --
    stage1_vmem = min(
        2 * (B * tv * wbytes + tv * Ep * wbytes + B * Ep * 4) + (2 << 20),
        64 << 20)

    partials = pl.pallas_call(
        _hidden_kernel,
        out_shape=jax.ShapeDtypeStruct((num_splits, B, Ep), jnp.float32),
        grid_spec=pltpu.PrefetchScalarGridSpec(
            num_scalar_prefetch=0,
            grid=(num_splits, n_k),
            in_specs=[
                pl.BlockSpec((B, tv), lambda i, k: (0, i * n_k + k)),   # x
                pl.BlockSpec((tv, Ep), lambda i, k: (i * n_k + k, 0)),  # W_in^T
            ],
            out_specs=pl.BlockSpec((None, B, Ep), lambda i, k: (i, 0, 0)),
        ),
        compiler_params=pltpu.CompilerParams(
            dimension_semantics=("parallel", "arbitrary"),
            vmem_limit_bytes=stage1_vmem),
        cost_estimate=pl.CostEstimate(
            flops=2 * B * Vp * Ep,
            transcendentals=0,
            bytes_accessed=wbytes * (B * Vp + Vp * Ep)
                           + 4 * num_splits * B * Ep),
    )(x_p, w_in_t)

    # Combine the (at most 2) per-core partials; tiny (B, Ep) op.
    hidden = jnp.sum(partials, axis=0).astype(wdt)          # (B, Ep)

    # ---- stage 2: out = hidden @ W_out^T (parallel over output-V tiles) ----
    stage2_vmem = min(
        2 * (B * Ep * wbytes + Ep * tv * wbytes + B * tv * 4) + (2 << 20),
        64 << 20)

    out_p = pl.pallas_call(
        _output_kernel,
        out_shape=jax.ShapeDtypeStruct((B, Vp), jnp.float32),
        grid_spec=pltpu.PrefetchScalarGridSpec(
            num_scalar_prefetch=0,
            grid=(n_tiles,),
            in_specs=[
                pl.BlockSpec((B, Ep), lambda j: (0, 0)),    # hidden, resident
                pl.BlockSpec((Ep, tv), lambda j: (0, j)),   # W_out^T tile
            ],
            out_specs=pl.BlockSpec((B, tv), lambda j: (0, j)),
        ),
        compiler_params=pltpu.CompilerParams(
            dimension_semantics=("parallel",),
            vmem_limit_bytes=stage2_vmem),
        cost_estimate=pl.CostEstimate(
            flops=2 * B * Ep * Vp,
            transcendentals=0,
            bytes_accessed=wbytes * (B * Ep + Ep * Vp) + 4 * B * Vp),
    )(hidden, w_out_t)

    # Slice the lane padding back off.
    return out_p[:, :V]


if __name__ == "__main__":
    # Small shapes consistent with the original script:
    #   batch=8, voc_size=16, embedding_size=2.
    batch = 8
    voc_size = 16
    embedding_size = 2

    key = jax.random.PRNGKey(0)
    k_x, k_w1, k_w2 = jax.random.split(key, 3)

    # Deterministic synthetic parameters (PyTorch Linear layout: (out, in)).
    w_in = jax.random.normal(k_w1, (embedding_size, voc_size), jnp.float32) * 0.1
    w_out = jax.random.normal(k_w2, (voc_size, embedding_size), jnp.float32) * 0.1

    # One-hot inputs as Skip-Gram would see (but any dense x works).
    idx = jax.random.randint(k_x, (batch,), 0, voc_size)
    x = jax.nn.one_hot(idx, voc_size, dtype=jnp.float32)

    # One-time weight preparation (cached across forward calls).
    params = prepare_skipgram_params(w_in, w_out)

    out = jax.block_until_ready(skipgram_forward(x, params))
    assert out.shape == (batch, voc_size)

    # Tight check against the exact math the kernel does (bf16-rounded
    # weights, f32 accumulation).
    w_in_q = w_in.astype(jnp.bfloat16).astype(jnp.float32)
    w_out_q = w_out.astype(jnp.bfloat16).astype(jnp.float32)
    ref_q = (x @ w_in_q.T) @ w_out_q.T
    assert jnp.allclose(out, ref_q, atol=1e-5, rtol=1e-5)

    # Loose sanity check against the full-f32 PyTorch-equivalent reference.
    ref = (x @ w_in.T) @ w_out.T
    assert jnp.allclose(out, ref, atol=5e-3, rtol=5e-2)

    print("KERNEL_OK")
</pallas_src>

<mosaic_0001>
module attributes {stable_mosaic.version = 11 : i64} {
  func.func @_hidden_kernel(%arg0: i32, %arg1: i32, %arg2: memref<8x128xbf16, #tpu.memory_space<vmem>>, %arg3: memref<128x128xbf16, #tpu.memory_space<vmem>>, %arg4: memref<1x8x128xf32, #tpu.memory_space<vmem>>) attributes {dimension_semantics = [#tpu.dimension_semantics<parallel>, #tpu.dimension_semantics<arbitrary>], iteration_bounds = array<i64: 1, 1>, scalar_prefetch = 0 : i64, scratch_operands = 0 : i64, tpu.core_type = #tpu.core_type<tc>, window_params = [{transform_indices = @transform_0, window_bounds = array<i64: 8, 128>}, {transform_indices = @transform_1, window_bounds = array<i64: 128, 128>}, {transform_indices = @transform_2, window_bounds = array<i64: 1, 8, 128>}]} {
    %c0_i32 = arith.constant 0 : i32
    %0 = arith.cmpi eq, %arg1, %c0_i32 : i32
    %1 = arith.extui %0 : i1 to i32
    %c0_i32_0 = arith.constant 0 : i32
    %2 = arith.cmpi ne, %1, %c0_i32_0 : i32
    scf.if %2 {
      %cst_10 = arith.constant 0.000000e+00 : f32
      %12 = vector.broadcast %cst_10 : f32 to vector<8x128xf32>
      %c0_11 = arith.constant 0 : index
      %c0_12 = arith.constant 0 : index
      %c0_13 = arith.constant 0 : index
      %13 = vector.load %arg4[%c0_11, %c0_12, %c0_13] : memref<1x8x128xf32, #tpu.memory_space<vmem>>, vector<1x8x128xf32>
      %14 = vector.shape_cast %13 : vector<1x8x128xf32> to vector<8x128xf32>
      %15 = vector.shape_cast %12 : vector<8x128xf32> to vector<1x8x128xf32>
      tpu.vector_store %arg4[%c0_11, %c0_12, %c0_13], %15 {strides = array<i32>} : memref<1x8x128xf32, #tpu.memory_space<vmem>>, vector<1x8x128xf32>,
    } else {
    }
    %c0 = arith.constant 0 : index
    %c0_1 = arith.constant 0 : index
    %c0_2 = arith.constant 0 : index
    %3 = vector.load %arg4[%c0, %c0_1, %c0_2] : memref<1x8x128xf32, #tpu.memory_space<vmem>>, vector<1x8x128xf32>
    %4 = vector.shape_cast %3 : vector<1x8x128xf32> to vector<8x128xf32>
    %c0_3 = arith.constant 0 : index
    %c0_4 = arith.constant 0 : index
    %5 = vector.load %arg2[%c0_3, %c0_4] : memref<8x128xbf16, #tpu.memory_space<vmem>>, vector<8x128xbf16>
    %c0_5 = arith.constant 0 : index
    %c0_6 = arith.constant 0 : index
    %6 = vector.load %arg3[%c0_5, %c0_6] : memref<128x128xbf16, #tpu.memory_space<vmem>>, vector<128x128xbf16>
    %cst = arith.constant dense<0.000000e+00> : vector<8x128xf32>
    %7 = tpu.matmul %5, %6, %cst {dimension_numbers = #tpu.dot_dimension_numbers<[1], [0], [0], [1], [0, 0, 1, 1], [], []>} : vector<8x128xbf16>, vector<128x128xbf16>, vector<8x128xf32> -> vector<8x128xf32>
    %8 = arith.addf %4, %7 : vector<8x128xf32>
    %c0_7 = arith.constant 0 : index
    %c0_8 = arith.constant 0 : index
    %c0_9 = arith.constant 0 : index
    %9 = vector.load %arg4[%c0_7, %c0_8, %c0_9] : memref<1x8x128xf32, #tpu.memory_space<vmem>>, vector<1x8x128xf32>
    %10 = vector.shape_cast %9 : vector<1x8x128xf32> to vector<8x128xf32>
    %11 = vector.shape_cast %8 : vector<8x128xf32> to vector<1x8x128xf32>
    tpu.vector_store %arg4[%c0_7, %c0_8, %c0_9], %11 {strides = array<i32>} : memref<1x8x128xf32, #tpu.memory_space<vmem>>, vector<1x8x128xf32>,
    return
  }
  func.func @transform_0(%arg0: i32, %arg1: i32) -> (i32, i32) {
    %c1_i32 = arith.constant 1 : i32
    %0 = arith.muli %arg0, %c1_i32 : i32
    %1 = arith.addi %0, %arg1 : i32
    %c0_i32 = arith.constant 0 : i32
    %c0_i32_0 = arith.constant 0 : i32
    return %c0_i32, %1 : i32, i32
  }
  func.func @transform_1(%arg0: i32, %arg1: i32) -> (i32, i32) {
    %c1_i32 = arith.constant 1 : i32
    %0 = arith.muli %arg0, %c1_i32 : i32
    %1 = arith.addi %0, %arg1 : i32
    %c0_i32 = arith.constant 0 : i32
    %c0_i32_0 = arith.constant 0 : i32
    return %1, %c0_i32 : i32, i32
  }
  func.func @transform_2(%arg0: i32, %arg1: i32) -> (i32, i32, i32) {
    %c0_i32 = arith.constant 0 : i32
    %c0_i32_0 = arith.constant 0 : i32
    %c0_i32_1 = arith.constant 0 : i32
    return %arg0, %c0_i32, %c0_i32_0 : i32, i32, i32
  }
}

</mosaic_0001>

<bundles_post_ra>
// kernel: tpu_custom_call.1
= control target key start
LH: loop header
LB: loop body
LE: loop exit
PB: predicated region body
PF: predicated region fallthrough
CT: control target
= control target key end

     0   :  { %7 = vsyncpa [#allocation3], 0  ;;  %s327_s0 = inlined_call_operand.hbm [shape: bf16[8,128], index: 0, kind: input, shape index: {}]   ;;  %s328_s1 = inlined_call_operand.hbm [shape: bf16[128,128], index: 1, kind: input, shape index: {}]   ;;  %s329_s2 = inlined_call_operand.hbm [shape: f32[1,8,128], index: 2, kind: output, shape index: {}]  }
   0x1   :  { %8 = vsyncpa [#allocation6], 0 }
   0x2   :  { %9 = vsyncpa [#allocation4], 0  ;;  %s296_s9 = smov [#allocation2]   ;;  %s297_s11 = smov [#allocation5]  }
   0x3   :  { %s19_s10 = sshll.u32 %s296_s9, 4  ;;  %s32_s12 = sshll.u32 %s297_s11, 4  ;;  %s20_s10 = int_to_ptr.vmem [resolvable:$true] %s19_s10  ;;  %s33_s12 = int_to_ptr.vmem [resolvable:$true] %s32_s12 }
   0x4   :  { %s238_s13 = scalar_lea.vmem %s20_s10, 64  ;;  %p243_p1 = scmp.lt.s32.totalorder %s20_s10, %s20_s10 }
   0x5   :  { %p239_p0 = scmp.ne.s32.totalorder %s20_s10, %s238_s13  ;;  %p244_p2 = scmp.lt.s32.totalorder %s238_s13, %s238_s13 }
   0x7   :  { %p245_p3 = por %p244_p2, %p243_p1 }
   0x9   :  { %p246_p4 = pnand %p245_p3, %p239_p0 }
   0xb   :  { %249 = shalt.err (!%p246_p4)
}
   0xc   :  { %22 = dma.hbm_to_vmem [thread:$0]  %s327_s0, 64, %s20_s10, [#allocation3]  }
   0xd   :  { %s258_s16 = scalar_lea.vmem %s33_s12, 1024  ;;  %p263_p6 = scmp.lt.s32.totalorder %s33_s12, %s33_s12 }
   0xe   :  { %p259_p5 = scmp.ne.s32.totalorder %s33_s12, %s258_s16  ;;  %p264_p7 = scmp.lt.s32.totalorder %s258_s16, %s258_s16 }
  0x10   :  { %p265_p8 = por %p264_p7, %p263_p6 }
  0x12   :  { %p266_p9 = pnand %p265_p8, %p259_p5 }
  0x14   :  { %269 = shalt.err (!%p266_p9)
}
  0x15   :  { %s298_s17 = smov 64   ;;  %s299_s18 = smov 4  }
  0x16   :  { %38 = dma.hbm_to_vmem [thread:$0]  %s328_s1, 1024, %s33_s12, [#allocation6], %s298_s17, %s298_s17, %s299_s18  }
  0x17   :  { %290 = dma.done.wait [#allocation3], 64  }
  0x18   :  { %291 = vsyncadd [#allocation3], 4294967232 }
  0x19   :  { %292 = dma.done.wait [#allocation6], 1024  }
  0x1a   :  { %293 = vsyncadd [#allocation6], 4294966272  ;;  %v300_v0 = vmov 0.0   ;;  %vm301_vm0 = vmmov 0   ;;  %v222_v1 = vld [vmem:[#allocation5 + $0x38] sm:$0xff]   ;;  %v223_v2 = vld [vmem:[#allocation5 + $0x30] sm:$0xff]  }
  0x1b   :  { %195 = vmatprep.subr.bf16.mxu0 %v300_v0  ;;  %211 = vmatprep.mubr.msk.bf16.mxu0 %vm301_vm0, %v300_v0  ;;  %v224_v3 = vld [vmem:[#allocation5 + $0x28] sm:$0xff]   ;;  %v225_v4 = vld [vmem:[#allocation5 + $0x20] sm:$0xff]   ;;  %v226_v5 = vld [vmem:[#allocation5 + $0x18] sm:$0xff]   ;;  %s302_s0 = smov [#allocation7]  }
  0x1c   :  { %196 = vmatpush3.bf16.msra.mxu0 %v222_v1  ;;  %v227_v6 = vld [vmem:[#allocation5 + $0x10] sm:$0xff]   ;;  %v228_v7 = vld [vmem:[#allocation5 + $0x8] sm:$0xff]   ;;  %v229_v8 = vld [vmem:[#allocation5] sm:$0xff]   ;;  %s168_s1 = sshll.u32 %s302_s0, 4  ;;  %s169_s1 = int_to_ptr.vmem [resolvable:$true] %s168_s1 }
  0x1d   :  { %197 = vmatprep.subr.bf16.mxu0 %v300_v0  ;;  %v55_v9 = vld [vmem:[#allocation2] sm:$0xf]  ;;  %s270_s21 = scalar_lea.vmem %s169_s1, 128  ;;  %p275_p11 = scmp.lt.s32.totalorder %s169_s1, %s169_s1 }
  0x1e   :  { %p271_p10 = scmp.ne.s32.totalorder %s169_s1, %s270_s21  ;;  %p276_p12 = scmp.lt.s32.totalorder %s270_s21, %s270_s21 }
  0x20   :  { %198 = vmatpush3.bf16.msra.mxu0 %v223_v2  ;;  %p277_p13 = por %p276_p12, %p275_p11 }
  0x21   :  { %199 = vmatprep.subr.bf16.mxu0 %v300_v0 }
  0x22   :  { %p278_p0 = pnand %p277_p13, %p271_p10 }
  0x24   :  { %200 = vmatpush3.bf16.msra.mxu0 %v224_v3 }
  0x25   :  { %201 = vmatprep.subr.bf16.mxu0 %v300_v0 }
  0x28   :  { %202 = vmatpush3.bf16.msra.mxu0 %v225_v4 }
  0x29   :  { %203 = vmatprep.subr.bf16.mxu0 %v300_v0 }
  0x2c   :  { %204 = vmatpush3.bf16.msra.mxu0 %v226_v5 }
  0x2d   :  { %205 = vmatprep.subr.bf16.mxu0 %v300_v0 }
  0x30   :  { %206 = vmatpush3.bf16.msra.mxu0 %v227_v6 }
  0x31   :  { %207 = vmatprep.subr.bf16.mxu0 %v300_v0 }
  0x34   :  { %208 = vmatpush3.bf16.msra.mxu0 %v228_v7 }
  0x35   :  { %209 = vmatprep.subr.bf16.mxu0 %v300_v0 }
  0x38   :  { %210 = vmatpush3.bf16.msra.mxu0 %v229_v8 }
  0x3b   :  { %212 = vmatmul.mubr.bf16.vlgmr.msra.gmra.mxu0 %v55_v9 }
  0xfb   :  { %v154_v10 = vpop.f32.mrf.mxu0 }
  0xfc   :  { %161 = vst [vmem:[#allocation7] sm:$0xff] %v154_v10 }
  0xfd   :  { %v213_v11 = vpop.f32.mrf.mxu0 }
  0xff   :  { %v157_v12 = vpop.f32.mrf.mxu0 }
 0x100   :  { %281 = shalt.err (!%p278_p0)
}
 0x101   :  { %171 = dma.vmem_to_hbm [thread:$0]  %s169_s1, 128, %s329_s2, [#allocation4]   ;;  %v214_v13 = vpop.f32.mrf.mxu0 }
 0x102   :  { %294 = dma.done.wait [#allocation4], 128  }
 0x103   :  { %295 = vsyncadd [#allocation4], 4294967168 }
 0x104   :  { %175 = vsyncpa [#allocation3], 1 }
 0x105   :  { %176 = vsyncpa [#allocation6], 1 }
 0x106   :  { %177 = vsyncpa [#allocation4], 1 }

</bundles_post_ra>
